<compile_context>
chip_gen: v7x
topology: tpu7x:2x2x1
jax: 0.10.0
libtpu: 0.0.40
codegen_flags: <defaults>
</compile_context>

<pallas_src>
import functools

import jax
import jax.numpy as jnp
from jax.experimental import pallas as pl
from jax.experimental.pallas import tpu as pltpu

_EPS = 1e-5      # nn.BatchNorm1d default
_SLOPE = 0.1     # LeakyReLU slope
_MAX_PAD = 3     # largest reflect pad used anywhere in the network


# ----------------------------------------------------------------------------
# Fused Gate kernel (whole network, one launch)
# ----------------------------------------------------------------------------
def _gate_kernel(x_ref, w_head_ref, w_resa_ref, w_mid_ref, w_resb_ref,
                 g_a_ref, b_a_ref, g_b_ref, b_b_ref, o_ref, *,
                 B, T, dim_in, n_experts, roll_is_jnp_like):
  N = B * T

  # ---- constants hoisted out of the 14-layer chain -------------------------
  # Boundary-lane masks (lane == b*T + t_loc for all b), one broadcasted_iota
  # per channel width, built once and reused by every layer.
  def _boundary_masks(c):
    lane = jax.lax.broadcasted_iota(jnp.int32, (c, N), 1)
    masks = {}
    for t_loc in tuple(range(_MAX_PAD)) + tuple(range(T - _MAX_PAD, T)):
      cond = lane == t_loc
      for b in range(1, B):
        cond = jnp.logical_or(cond, lane == b * T + t_loc)
      masks[t_loc] = cond
    return masks

  masks_by_c = {c: _boundary_masks(c) for c in {dim_in, n_experts}}

  def _fwd_roll(z, s):
    """out[:, t] = z[:, (t + s) % N]  -- one XLU lane rotate (or a no-op)."""
    if s % N == 0:
      return z
    amt = (-s) % N if roll_is_jnp_like else s % N
    return pltpu.roll(z, shift=amt, axis=1)

  def _reflect_shift(z, off, cout):
    """out[:, b*T + t] = z[:, b*T + reflect(t + off)] (reflect per batch half).

    Main body: one full-width lane rotate.  The |off| (<= 3) boundary columns
    of each batch half read the wrong half after the rotate and are patched
    with one extra rotate + select each (the same rotate amount is valid for
    every batch half because the halves are T-periodic along lanes).
    """
    if off == 0:
      return z
    out = _fwd_roll(z, off)
    masks = masks_by_c[cout]
    for j in range(abs(off)):
      if off > 0:
        t_loc = T - off + j                  # boundary lane within each half
        src = 2 * (T - 1) - (t_loc + off)    # reflected source column
      else:
        t_loc = j
        src = -(t_loc + off)
      patch = _fwd_roll(z, src - t_loc)
      out = jnp.where(masks[t_loc], patch, out)
    return out

  def _conv_bn_lrelu(act, w_of_k, gamma, beta, *, K, dilation, cout):
    """Reflect-Conv1d + training-mode BatchNorm1d + LeakyReLU(0.1), fused.

    "Shift the outputs, not the inputs": K tiny (Cout, Cin) x (Cin, N) MXU
    dots on the unshifted activations (single bf16 cast), each f32 result is
    reflect-shifted by its tap offset and accumulated in f32.
    """
    xb = act.astype(jnp.bfloat16)            # one cast per layer
    pad = dilation * (K - 1) // 2
    y = None
    for k in range(K):
      off = k * dilation - pad
      z = jnp.dot(w_of_k(k), xb, preferred_element_type=jnp.float32)
      zs = _reflect_shift(z, off, cout)
      y = zs if y is None else y + zs

    # BatchNorm1d over (batch, time) = all N lanes, single pass: sum and
    # sum-of-squares share one lane reduction (stacked on the sublane axis).
    # (E[y^2]-E[y]^2 in f32 is fine here: activations are O(1) post-BN.)
    stats = jnp.sum(jnp.concatenate([y, y * y], axis=0),
                    axis=1, keepdims=True) * (1.0 / N)        # (2*Cout, 1)
    mean, ex2 = stats[:cout], stats[cout:]
    var = ex2 - mean * mean                  # biased variance (training mode)
    scale = gamma * jax.lax.rsqrt(var + _EPS)
    shift = beta - mean * scale
    zn = y * scale + shift
    return jnp.maximum(zn, _SLOPE * zn)      # LeakyReLU(0.1)

  # ---- the 14-layer network; everything stays vreg/VMEM resident -----------
  # head: Conv1d(dim_in, dim_in, k=5, pad=2, reflect) + BN + LReLU
  act = _conv_bn_lrelu(x_ref[...], lambda k: w_head_ref[k],
                       g_a_ref[0], b_a_ref[0], K=5, dilation=1, cout=dim_in)

  # 3x ResBlock1d(dim_in, dilation=3); residual stays in vregs
  for i in range(3):
    h = _conv_bn_lrelu(act, lambda k, i=i: w_resa_ref[2 * i, k],
                       g_a_ref[1 + 2 * i], b_a_ref[1 + 2 * i],
                       K=3, dilation=3, cout=dim_in)
    h = _conv_bn_lrelu(h, lambda k, i=i: w_resa_ref[2 * i + 1, k],
                       g_a_ref[2 + 2 * i], b_a_ref[2 + 2 * i],
                       K=3, dilation=1, cout=dim_in)
    act = act + h

  # mid: Conv1d(dim_in, n_experts, k=3, pad=1, reflect) + BN + LReLU
  act = _conv_bn_lrelu(act, lambda k: w_mid_ref[k],
                       g_b_ref[0], b_b_ref[0], K=3, dilation=1, cout=n_experts)

  # 3x ResBlock1d(n_experts, dilation=3)
  for i in range(3):
    h = _conv_bn_lrelu(act, lambda k, i=i: w_resb_ref[2 * i, k],
                       g_b_ref[1 + 2 * i], b_b_ref[1 + 2 * i],
                       K=3, dilation=3, cout=n_experts)
    h = _conv_bn_lrelu(h, lambda k, i=i: w_resb_ref[2 * i + 1, k],
                       g_b_ref[2 + 2 * i], b_b_ref[2 + 2 * i],
                       K=3, dilation=1, cout=n_experts)
    act = act + h

  o_ref[...] = act.astype(o_ref.dtype)


# ----------------------------------------------------------------------------
# Parameter construction / packing (done once, outside the hot path)
# ----------------------------------------------------------------------------
def make_gate_params(key, dim_in, n_experts):
  keys = iter(jax.random.split(key, 128))

  def conv_w(cout, cin, k):
    return 0.2 * jax.random.normal(next(keys), (cout, cin, k), jnp.float32)

  def bn(c):
    gamma = 1.0 + 0.1 * jax.random.normal(next(keys), (c,), jnp.float32)
    beta = 0.1 * jax.random.normal(next(keys), (c,), jnp.float32)
    return gamma, beta

  def resblock(c):
    return ((conv_w(c, c, 3),) + bn(c),      # conv k=3 dilation=3
            (conv_w(c, c, 3),) + bn(c))      # conv k=3 dilation=1

  return {
      "head": (conv_w(dim_in, dim_in, 5),) + bn(dim_in),
      "res_a": [resblock(dim_in) for _ in range(3)],
      "mid": (conv_w(n_experts, dim_in, 3),) + bn(n_experts),
      "res_b": [resblock(n_experts) for _ in range(3)],
  }


def _pack_conv_weight(w):
  """(Cout, Cin, K) f32 -> (K, Cout, Cin) bf16 (one tiny matrix per tap)."""
  return jnp.transpose(w, (2, 0, 1)).astype(jnp.bfloat16)


def pack_gate_params(params):
  """Pre-materialize kernel-format weights / BN params once (off hot path)."""
  w_h, g_h, b_h = params["head"]
  w_m, g_m, b_m = params["mid"]
  res_a = [lyr for blk in params["res_a"] for lyr in blk]   # 6 x (w, g, b)
  res_b = [lyr for blk in params["res_b"] for lyr in blk]

  def stack_cb(first, rest):   # -> (n_layers, C, 1) f32, channels on sublanes
    return jnp.stack([first] + rest, axis=0)[..., None].astype(jnp.float32)

  return {
      "w_head": _pack_conv_weight(w_h),                                 # (5,D,D)
      "w_resa": jnp.stack([_pack_conv_weight(w) for w, _, _ in res_a]), # (6,3,D,D)
      "w_mid": _pack_conv_weight(w_m),                                  # (3,E,D)
      "w_resb": jnp.stack([_pack_conv_weight(w) for w, _, _ in res_b]), # (6,3,E,E)
      "g_a": stack_cb(g_h, [g for _, g, _ in res_a]),                   # (7,D,1)
      "b_a": stack_cb(b_h, [b for _, _, b in res_a]),                   # (7,D,1)
      "g_b": stack_cb(g_m, [g for _, g, _ in res_b]),                   # (7,E,1)
      "b_b": stack_cb(b_m, [b for _, _, b in res_b]),                   # (7,E,1)
  }


# ----------------------------------------------------------------------------
# Gate.forward
# ----------------------------------------------------------------------------
def gate_forward(x, packed, *, n_experts, roll_is_jnp_like=True):
  """x: (B, dim_in, T) f32 -> (B, n_experts, T) f32."""
  B, dim_in, T = x.shape
  assert T > 2 * _MAX_PAD, "reflect padding requires T > 2 * max_pad"

  # Fold batch into the lane axis: (B, C, T) -> (C, B*T); B*T is lane-dense.
  x2 = jnp.transpose(x, (1, 0, 2)).reshape(dim_in, B * T).astype(jnp.float32)

  kernel = functools.partial(_gate_kernel, B=B, T=T, dim_in=dim_in,
                             n_experts=n_experts,
                             roll_is_jnp_like=roll_is_jnp_like)
  vmem = functools.partial(pl.BlockSpec, memory_space=pltpu.MemorySpace.VMEM)
  inputs = (x2, packed["w_head"], packed["w_resa"], packed["w_mid"],
            packed["w_resb"], packed["g_a"], packed["b_a"],
            packed["g_b"], packed["b_b"])

  out = pl.pallas_call(
      kernel,
      out_shape=jax.ShapeDtypeStruct((n_experts, B * T), jnp.float32),
      in_specs=[vmem() for _ in inputs],
      out_specs=vmem(),
  )(*inputs)

  # (E, B*T) lane-dense kernel output -> (B, E, T)
  return jnp.transpose(out.reshape(n_experts, B, T), (1, 0, 2))


# ----------------------------------------------------------------------------
# One-time setup probe + pure-JAX reference (correctness only, not hot path)
# ----------------------------------------------------------------------------
def probe_roll_is_jnp_like():
  """Probe pltpu.roll's sign convention once; the kernel derives its rotate
  amounts from the result, so it is correct under either convention."""
  def kernel(x_ref, o_ref):
    o_ref[...] = pltpu.roll(x_ref[...], shift=1, axis=1)

  x = jnp.tile(jnp.arange(128, dtype=jnp.float32)[None, :], (8, 1))
  out = pl.pallas_call(
      kernel,
      out_shape=jax.ShapeDtypeStruct((8, 128), jnp.float32),
      in_specs=[pl.BlockSpec(memory_space=pltpu.MemorySpace.VMEM)],
      out_specs=pl.BlockSpec(memory_space=pltpu.MemorySpace.VMEM),
  )(x)
  return bool(out[0, 0] == 127.0)   # jnp.roll(x, 1)[0] == x[-1] == 127


def reference_gate(x, params):
  """Pure-JAX reference of the PyTorch Gate forward (training-mode BN).

  Per-layer conv inputs / weights are cast to bf16 to match the kernel's MXU
  operand precision, so the check isolates structural correctness (reflect
  padding, dilations, BN, residuals) from known bf16 rounding.
  """
  def conv_reflect(x, w, dilation):
    k = w.shape[-1]
    pad = dilation * (k - 1) // 2
    xp = jnp.pad(x.astype(jnp.bfloat16), ((0, 0), (0, 0), (pad, pad)),
                 mode="reflect")
    return jax.lax.conv_general_dilated(
        xp, w.astype(jnp.bfloat16), window_strides=(1,), padding="VALID",
        rhs_dilation=(dilation,), dimension_numbers=("NCH", "OIH", "NCH"),
        preferred_element_type=jnp.float32)

  def bn_lrelu(y, gamma, beta):
    mean = jnp.mean(y, axis=(0, 2), keepdims=True)
    var = jnp.mean(jnp.square(y - mean), axis=(0, 2), keepdims=True)
    z = (y - mean) * jax.lax.rsqrt(var + _EPS)
    z = z * gamma[None, :, None] + beta[None, :, None]
    return jnp.where(z >= 0, z, _SLOPE * z)

  def layer(x, p, dilation):
    w, g, b = p
    return bn_lrelu(conv_reflect(x, w, dilation), g, b)

  y = layer(x, params["head"], 1)
  for blk in params["res_a"]:
    y = y + layer(layer(y, blk[0], 3), blk[1], 1)
  y = layer(y, params["mid"], 1)
  for blk in params["res_b"]:
    y = y + layer(layer(y, blk[0], 3), blk[1], 1)
  return y


if __name__ == "__main__":
  B, DIM_IN, N_EXPERTS, T = 2, 8, 4, 64   # B*T = 128 (one full lane width)

  key = jax.random.PRNGKey(0)
  k_x, k_p = jax.random.split(key)
  x = jax.random.normal(k_x, (B, DIM_IN, T), jnp.float32)

  params = make_gate_params(k_p, DIM_IN, N_EXPERTS)
  packed = pack_gate_params(params)            # packed once, off the hot path
  roll_is_jnp_like = probe_roll_is_jnp_like()  # one-time setup probe

  fwd = jax.jit(functools.partial(gate_forward, n_experts=N_EXPERTS,
                                  roll_is_jnp_like=roll_is_jnp_like))
  y = fwd(x, packed)
  jax.block_until_ready(y)

  assert y.shape == (B, N_EXPERTS, T), y.shape
  assert bool(jnp.all(jnp.isfinite(y)))

  # Structural parity vs a precision-matched pure-JAX reference of the module.
  y_ref = reference_gate(x, params)
  max_err = float(jnp.max(jnp.abs(y - y_ref)))
  assert max_err < 0.1, f"parity check failed: max abs err = {max_err}"

  print("KERNEL_OK")
</pallas_src>

<mosaic_0001>
module attributes {stable_mosaic.version = 11 : i64} {
  func.func @kernel(%arg0: memref<8x128xf32, #tpu.memory_space<vmem>>, %arg1: memref<8x128xf32, #tpu.memory_space<vmem>>) attributes {dimension_semantics = [], scalar_prefetch = 0 : i64, scratch_operands = 0 : i64, tpu.core_type = #tpu.core_type<tc>} {
    %c0 = arith.constant 0 : index
    %c0_0 = arith.constant 0 : index
    %0 = vector.load %arg0[%c0, %c0_0] : memref<8x128xf32, #tpu.memory_space<vmem>>, vector<8x128xf32>
    %c1_i32 = arith.constant 1 : i32
    %1 = tpu.dynamic_rotate %0 by %c1_i32 dim 1 : vector<8x128xf32>, i32 -> vector<8x128xf32>
    %c0_1 = arith.constant 0 : index
    %c0_2 = arith.constant 0 : index
    %2 = vector.load %arg1[%c0_1, %c0_2] : memref<8x128xf32, #tpu.memory_space<vmem>>, vector<8x128xf32>
    tpu.vector_store %arg1[%c0_1, %c0_2], %1 {strides = array<i32>} : memref<8x128xf32, #tpu.memory_space<vmem>>, vector<8x128xf32>,
    return
  }
}

</mosaic_0001>

<bundles_post_ra>
// kernel: tpu_custom_call.1
= control target key start
LH: loop header
LB: loop body
LE: loop exit
PB: predicated region body
PF: predicated region fallthrough
CT: control target
= control target key end

     0   :  { %6 = vsyncpa [#allocation3], 0  ;;  %s128_s0 = inlined_call_operand.hbm [shape: f32[8,128], index: 0, kind: input, shape index: {}]   ;;  %s129_s1 = inlined_call_operand.hbm [shape: f32[8,128], index: 1, kind: output, shape index: {}]  }
   0x1   :  { %7 = vsyncpa [#allocation4], 0  ;;  %s91_s6 = smov [#allocation2]   ;;  %s43_s10 = scalar_lea.hbm %s128_s0, 128 }
   0x2   :  { %s14_s7 = sshll.u32 %s91_s6, 4  ;;  %p44_p0 = scmp.ne.s32.totalorder %s128_s0, %s43_s10  ;;  %s15_s7 = int_to_ptr.vmem [resolvable:$true] %s14_s7 }
   0x3   :  { %p47_p1 = scmp.lt.u32.totalorder %s43_s10, %s128_s0 }
   0x5   :  { %p49_p2 = pnand %p47_p1, %p44_p0 }
   0x7   :  { %52 = shalt.err (!%p49_p2)
}
   0x8   :  { %s53_s15 = scalar_lea.vmem %s15_s7, 128  ;;  %p58_p4 = scmp.lt.s32.totalorder %s15_s7, %s15_s7 }
   0x9   :  { %p54_p3 = scmp.ne.s32.totalorder %s15_s7, %s53_s15  ;;  %p59_p5 = scmp.lt.s32.totalorder %s53_s15, %s53_s15 }
   0xb   :  { %p60_p6 = por %p59_p5, %p58_p4 }
   0xd   :  { %p61_p7 = pnand %p60_p6, %p54_p3 }
   0xf   :  { %64 = shalt.err (!%p61_p7)
}
  0x10   :  { %17 = dma.hbm_to_vmem [thread:$0]  %s128_s0, 128, %s15_s7, [#allocation3]  }
  0x11   :  { %87 = dma.done.wait [#allocation3], 128  }
  0x12   :  { %88 = vsyncadd [#allocation3], 4294967168  ;;  %v21_v0 = vld [vmem:[#allocation2] sm:$0xff]  ;;  %s92_s18 = smov 1   ;;  %s93_s19 = smov [#allocation5]  }
  0x13   :  { %22 = vrot.lane.b32.xlu0 %v21_v0, %s92_s18  ;;  %s31_s20 = sshll.u32 %s93_s19, 4  ;;  %s32_s20 = int_to_ptr.vmem [resolvable:$true] %s31_s20 }
  0x14   :  { %s65_s21 = scalar_lea.vmem %s32_s20, 128  ;;  %p70_p9 = scmp.lt.s32.totalorder %s32_s20, %s32_s20 }
  0x15   :  { %p66_p8 = scmp.ne.s32.totalorder %s32_s20, %s65_s21  ;;  %p71_p10 = scmp.lt.s32.totalorder %s65_s21, %s65_s21 }
  0x17   :  { %p72_p11 = por %p71_p10, %p70_p9 }
  0x19   :  { %p73_p12 = pnand %p72_p11, %p66_p8 }
  0x85   :  { %v23_v1 = vpop.permute.xlu0 %22 }
  0x86   :  { %24 = vst [vmem:[#allocation5] sm:$0xff] %v23_v1 }
  0x87   :  { %76 = shalt.err (!%p73_p12)
}
  0x88   :  { %s77_s0 = scalar_lea.hbm %s129_s1, 128 }
  0x89   :  { %p78_p13 = scmp.ne.s32.totalorder %s129_s1, %s77_s0  ;;  %p81_p0 = scmp.lt.u32.totalorder %s77_s0, %s129_s1 }
  0x8b   :  { %p83_p1 = pnand %p81_p0, %p78_p13 }
  0x8d   :  { %86 = shalt.err (!%p83_p1)
}
  0x8e   :  { %34 = dma.vmem_to_hbm [thread:$0]  %s32_s20, 128, %s129_s1, [#allocation4]  }
  0x8f   :  { %89 = dma.done.wait [#allocation4], 128  }
  0x90   :  { %90 = vsyncadd [#allocation4], 4294967168 }
  0x91   :  { %38 = vsyncpa [#allocation3], 1 }
  0x92   :  { %39 = vsyncpa [#allocation4], 1 }

</bundles_post_ra>
